<compile_context>
chip_gen: v7x
topology: tpu7x:2x2x1
jax: 0.10.0
libtpu: 0.0.40
codegen_flags: <defaults>
</compile_context>

<pallas_src>
import functools

import jax
import jax.numpy as jnp
from jax.experimental import pallas as pl
from jax.experimental.pallas import tpu as pltpu

_LANE = 128
_SUBLANE = 8


def _round_up(n, m):
    return ((n + m - 1) // m) * m


def _cdiv(a, b):
    return (a + b - 1) // b


@functools.lru_cache(maxsize=1)
def _vmem_capacity_bytes():
    """Physical VMEM per core (trace-time query); conservative fallback."""
    try:
        return int(pltpu.get_tpu_info().vmem_capacity_bytes)
    except Exception:
        return 64 * 1024 * 1024  # v7x-sized floor (smallest of v5e/v6e/v7x)


# --------------------------------------------------------------------------
# Kernel
# --------------------------------------------------------------------------
def _joint_cls_kernel(x_ref, y_ref, w1_ref, w2_ref, b_in_ref,
                      w_out_ref, b_out_ref, o_ref):
    cdt = w1_ref.dtype
    # Layer 1, fused across the two branches: both dots accumulate into one
    # f32 [TB, H2p] tile (cols [:H] <- x @ w1.T, cols [H:2H] <- y @ w2.T,
    # padded columns contribute exactly 0).  Activation cast happens here so
    # the HBM stream stays at one f32 read of x/y.
    h = jnp.dot(x_ref[...].astype(cdt), w1_ref[...],
                preferred_element_type=jnp.float32)
    h = h + jnp.dot(y_ref[...].astype(cdt), w2_ref[...],
                    preferred_element_type=jnp.float32)
    h = h + b_in_ref[...]

    # SiLU in f32 (VPU mul + EUP sigmoid) — exact, and v5e has no bf16 VPU/EUP.
    s = h * jax.nn.sigmoid(h)

    # Layer 2: [TB, H2p] @ [H2p, O] -> narrow, unpadded output tile.
    out = jnp.dot(s.astype(w_out_ref.dtype), w_out_ref[...],
                  preferred_element_type=jnp.float32)
    o_ref[...] = (out + b_out_ref[...]).astype(o_ref.dtype)


# --------------------------------------------------------------------------
# One-time weight preparation (hoisted out of the hot path)
# --------------------------------------------------------------------------
def prepare_params(params, compute_dtype=jnp.bfloat16):
    """Transpose / zero-pad / split weights once. PyTorch nn.Linear layout:
    w: [out_features, in_features]."""
    w1, b1 = params["w1"], params["b1"]          # [H, I], [H]
    w2, b2 = params["w2"], params["b2"]          # [H, A], [H]
    w3, b3 = params["w3"], params["b3"]          # [O, 2H], [O]

    H, I = w1.shape
    A = w2.shape[1]
    O = w3.shape[0]
    H2p = _round_up(2 * H, _LANE)                # lane-dense hidden dim

    # First-layer weight split into its two row blocks of the block-diagonal
    # matrix: x @ w1t + y @ w2t == [x@w1.T | y@w2.T | 0...] exactly.
    w1t = jnp.zeros((I, H2p), jnp.float32).at[:, :H].set(w1.T)
    w2t = jnp.zeros((A, H2p), jnp.float32).at[:, H:2 * H].set(w2.T)

    b_in = jnp.zeros((1, H2p), jnp.float32)
    b_in = b_in.at[0, :H].set(b1).at[0, H:2 * H].set(b2)

    # Second layer: padded hidden rows are zero; output stays unpadded (O).
    w_out = jnp.zeros((H2p, O), jnp.float32).at[:2 * H, :].set(w3.T)
    b_out = b3.reshape(1, O).astype(jnp.float32)

    return {
        "w1t": w1t.astype(compute_dtype),
        "w2t": w2t.astype(compute_dtype),
        "b_in": b_in,                            # bias adds stay f32
        "w_out": w_out.astype(compute_dtype),
        "b_out": b_out,
    }


# --------------------------------------------------------------------------
# Forward
# --------------------------------------------------------------------------
def _choose_batch_tiling(B, row_bytes, weight_bytes, vmem_bytes):
    """Generation-aware batch tile: fit double-buffered activation/output tiles
    plus (double-buffered) resident weights into ~75% of physical VMEM, bound
    batch padding to <~8 rows per tile, and prefer an even >=2-tile grid so the
    'parallel' axis can shard across both TensorCores on megacore parts."""
    B8 = _round_up(max(B, 1), _SUBLANE)
    budget = (vmem_bytes * 3) // 4
    avail = max(budget - 2 * weight_bytes, 1 << 18)
    cap = (avail // (2 * row_bytes)) // _SUBLANE * _SUBLANE
    cap = max(_SUBLANE, min(2048, cap))

    num_tiles = _cdiv(B8, cap)
    if num_tiles == 1 and B8 >= 2 * _SUBLANE:
        num_tiles = 2
    elif num_tiles > 1 and num_tiles % 2 == 1:
        num_tiles += 1

    tb = _round_up(_cdiv(B8, num_tiles), _SUBLANE)
    num_tiles = _cdiv(B8, tb)
    return tb, tb * num_tiles, num_tiles, int(budget)


@jax.jit
def _forward(x, y, w1t, w2t, b_in, w_out, b_out):
    B, I = x.shape
    A = y.shape[1]
    H2p, O = w_out.shape
    w_item = jnp.dtype(w1t.dtype).itemsize

    row_bytes = I * x.dtype.itemsize + A * y.dtype.itemsize + O * 4
    weight_bytes = ((I + A) * H2p + H2p * O) * w_item + (H2p + O) * 4
    TB, Bp, num_tiles, vmem_budget = _choose_batch_tiling(
        B, row_bytes, weight_bytes, _vmem_capacity_bytes())

    if Bp != B:  # bounded batch padding (only when the tile doesn't divide B)
        x = jnp.pad(x, ((0, Bp - B), (0, 0)))
        y = jnp.pad(y, ((0, Bp - B), (0, 0)))

    cost = pl.CostEstimate(
        flops=2 * Bp * H2p * (I + A + O),
        transcendentals=Bp * H2p,
        bytes_accessed=Bp * row_bytes + weight_bytes,
    )

    out = pl.pallas_call(
        _joint_cls_kernel,
        out_shape=jax.ShapeDtypeStruct((Bp, O), jnp.float32),
        grid=(num_tiles,),
        in_specs=[
            pl.BlockSpec((TB, I), lambda i: (i, 0)),     # x tile   (streamed)
            pl.BlockSpec((TB, A), lambda i: (i, 0)),     # y tile   (streamed)
            pl.BlockSpec((I, H2p), lambda i: (0, 0)),    # resident weights
            pl.BlockSpec((A, H2p), lambda i: (0, 0)),
            pl.BlockSpec((1, H2p), lambda i: (0, 0)),
            pl.BlockSpec((H2p, O), lambda i: (0, 0)),
            pl.BlockSpec((1, O), lambda i: (0, 0)),
        ],
        out_specs=pl.BlockSpec((TB, O), lambda i: (i, 0)),  # narrow output
        compiler_params=pltpu.CompilerParams(
            dimension_semantics=("parallel",),
            vmem_limit_bytes=vmem_budget,
        ),
        cost_estimate=cost,
    )(x, y, w1t, w2t, b_in, w_out, b_out)

    return out if Bp == B else out[:B]


def two_layer_joint_classification(x, y, prepared):
    """x: [B, input_size], y: [B, additional_feature_size] -> [B, output_size]."""
    return _forward(x, y, prepared["w1t"], prepared["w2t"], prepared["b_in"],
                    prepared["w_out"], prepared["b_out"])


# --------------------------------------------------------------------------
# Reference + test
# --------------------------------------------------------------------------
def _reference(x, y, params):
    o1 = x @ params["w1"].T + params["b1"]
    o2 = y @ params["w2"].T + params["b2"]
    joint = jnp.concatenate([o1, o2], axis=1)
    joint = joint * jax.nn.sigmoid(joint)
    return joint @ params["w3"].T + params["b3"]


if __name__ == "__main__":
    B = 8
    input_size = 32
    hidden_size = 32
    output_size = 8
    additional_feature_size = 16

    key = jax.random.PRNGKey(0)
    ks = jax.random.split(key, 8)

    # PyTorch nn.Linear weight layout: [out_features, in_features].
    params = {
        "w1": jax.random.normal(ks[0], (hidden_size, input_size), jnp.float32) * 0.1,
        "b1": jax.random.normal(ks[1], (hidden_size,), jnp.float32) * 0.1,
        "w2": jax.random.normal(ks[2], (hidden_size, additional_feature_size), jnp.float32) * 0.1,
        "b2": jax.random.normal(ks[3], (hidden_size,), jnp.float32) * 0.1,
        "w3": jax.random.normal(ks[4], (output_size, hidden_size * 2), jnp.float32) * 0.1,
        "b3": jax.random.normal(ks[5], (output_size,), jnp.float32) * 0.1,
    }

    x = jax.random.normal(ks[6], (B, input_size), jnp.float32)
    y = jax.random.normal(ks[7], (B, additional_feature_size), jnp.float32)

    ref = _reference(x, y, params)

    # 1) Exact path: f32 compute dtype, tight tolerance.
    prepared_f32 = prepare_params(params, compute_dtype=jnp.float32)
    out_f32 = jax.block_until_ready(two_layer_joint_classification(x, y, prepared_f32))
    assert out_f32.shape == (B, output_size)
    assert jnp.allclose(out_f32, ref, atol=1e-5, rtol=1e-5), "f32 mismatch vs reference"

    # 2) Performance path: bf16 MXU operands, f32 accumulation / f32 SiLU.
    prepared_bf16 = prepare_params(params, compute_dtype=jnp.bfloat16)
    out_bf16 = jax.block_until_ready(two_layer_joint_classification(x, y, prepared_bf16))
    assert out_bf16.shape == (B, output_size)
    assert jnp.allclose(out_bf16, ref, atol=5e-2, rtol=5e-2), "bf16 mismatch vs reference"

    print("KERNEL_OK")
</pallas_src>

<mosaic_0001>
module attributes {stable_mosaic.version = 11 : i64} {
  func.func @_joint_cls_kernel(%arg0: i32, %arg1: memref<8x32xf32, #tpu.memory_space<vmem>>, %arg2: memref<8x16xf32, #tpu.memory_space<vmem>>, %arg3: memref<32x128xf32, #tpu.memory_space<vmem>>, %arg4: memref<16x128xf32, #tpu.memory_space<vmem>>, %arg5: memref<1x128xf32, #tpu.memory_space<vmem>>, %arg6: memref<128x8xf32, #tpu.memory_space<vmem>>, %arg7: memref<1x8xf32, #tpu.memory_space<vmem>>, %arg8: memref<8x8xf32, #tpu.memory_space<vmem>>) attributes {dimension_semantics = [#tpu.dimension_semantics<parallel>], iteration_bounds = array<i64: 1>, scalar_prefetch = 0 : i64, scratch_operands = 0 : i64, tpu.core_type = #tpu.core_type<tc>, window_params = [{transform_indices = @transform_0, window_bounds = array<i64: 8, 32>}, {transform_indices = @transform_1, window_bounds = array<i64: 8, 16>}, {pipeline_mode = #tpu.pipeline_mode<synchronous>, transform_indices = @transform_2, window_bounds = array<i64: 32, 128>}, {pipeline_mode = #tpu.pipeline_mode<synchronous>, transform_indices = @transform_3, window_bounds = array<i64: 16, 128>}, {pipeline_mode = #tpu.pipeline_mode<synchronous>, transform_indices = @transform_4, window_bounds = array<i64: 1, 128>}, {pipeline_mode = #tpu.pipeline_mode<synchronous>, transform_indices = @transform_5, window_bounds = array<i64: 128, 8>}, {pipeline_mode = #tpu.pipeline_mode<synchronous>, transform_indices = @transform_6, window_bounds = array<i64: 1, 8>}, {transform_indices = @transform_7, window_bounds = array<i64: 8, 8>}]} {
    %c0 = arith.constant 0 : index
    %c0_0 = arith.constant 0 : index
    %0 = vector.load %arg1[%c0, %c0_0] : memref<8x32xf32, #tpu.memory_space<vmem>>, vector<8x32xf32>
    %c0_1 = arith.constant 0 : index
    %c0_2 = arith.constant 0 : index
    %1 = vector.load %arg3[%c0_1, %c0_2] : memref<32x128xf32, #tpu.memory_space<vmem>>, vector<32x128xf32>
    %cst = arith.constant dense<0.000000e+00> : vector<8x128xf32>
    %2 = tpu.matmul %0, %1, %cst {dimension_numbers = #tpu.dot_dimension_numbers<[1], [0], [0], [1], [0, 0, 1, 1], [], []>} : vector<8x32xf32>, vector<32x128xf32>, vector<8x128xf32> -> vector<8x128xf32>
    %c0_3 = arith.constant 0 : index
    %c0_4 = arith.constant 0 : index
    %3 = vector.load %arg2[%c0_3, %c0_4] : memref<8x16xf32, #tpu.memory_space<vmem>>, vector<8x16xf32>
    %c0_5 = arith.constant 0 : index
    %c0_6 = arith.constant 0 : index
    %4 = vector.load %arg4[%c0_5, %c0_6] : memref<16x128xf32, #tpu.memory_space<vmem>>, vector<16x128xf32>
    %cst_7 = arith.constant dense<0.000000e+00> : vector<8x128xf32>
    %5 = tpu.matmul %3, %4, %cst_7 {dimension_numbers = #tpu.dot_dimension_numbers<[1], [0], [0], [1], [0, 0, 1, 1], [], []>} : vector<8x16xf32>, vector<16x128xf32>, vector<8x128xf32> -> vector<8x128xf32>
    %6 = arith.addf %2, %5 : vector<8x128xf32>
    %c0_8 = arith.constant 0 : index
    %c0_9 = arith.constant 0 : index
    %7 = vector.load %arg5[%c0_8, %c0_9] : memref<1x128xf32, #tpu.memory_space<vmem>>, vector<1x128xf32>
    %8 = vector.broadcast %7 : vector<1x128xf32> to vector<8x128xf32>
    %9 = arith.addf %6, %8 : vector<8x128xf32>
    %10 = arith.negf %9 : vector<8x128xf32>
    %11 = math.exp %10 : vector<8x128xf32>
    %cst_10 = arith.constant 1.000000e+00 : f32
    %12 = vector.broadcast %cst_10 : f32 to vector<8x128xf32>
    %13 = arith.addf %12, %11 : vector<8x128xf32>
    %14 = arith.divf %12, %13 : vector<8x128xf32>
    %15 = arith.mulf %9, %14 : vector<8x128xf32>
    %c0_11 = arith.constant 0 : index
    %c0_12 = arith.constant 0 : index
    %16 = vector.load %arg6[%c0_11, %c0_12] : memref<128x8xf32, #tpu.memory_space<vmem>>, vector<128x8xf32>
    %cst_13 = arith.constant dense<0.000000e+00> : vector<8x8xf32>
    %17 = tpu.matmul %15, %16, %cst_13 {dimension_numbers = #tpu.dot_dimension_numbers<[1], [0], [0], [1], [0, 0, 1, 1], [], []>} : vector<8x128xf32>, vector<128x8xf32>, vector<8x8xf32> -> vector<8x8xf32>
    %c0_14 = arith.constant 0 : index
    %c0_15 = arith.constant 0 : index
    %18 = vector.load %arg7[%c0_14, %c0_15] : memref<1x8xf32, #tpu.memory_space<vmem>>, vector<1x8xf32>
    %19 = vector.broadcast %18 : vector<1x8xf32> to vector<8x8xf32>
    %20 = arith.addf %17, %19 : vector<8x8xf32>
    %c0_16 = arith.constant 0 : index
    %c0_17 = arith.constant 0 : index
    %21 = vector.load %arg8[%c0_16, %c0_17] : memref<8x8xf32, #tpu.memory_space<vmem>>, vector<8x8xf32>
    tpu.vector_store %arg8[%c0_16, %c0_17], %20 {strides = array<i32>} : memref<8x8xf32, #tpu.memory_space<vmem>>, vector<8x8xf32>,
    return
  }
  func.func @transform_0(%arg0: i32) -> (i32, i32) {
    %c0_i32 = arith.constant 0 : i32
    %c0_i32_0 = arith.constant 0 : i32
    return %arg0, %c0_i32 : i32, i32
  }
  func.func @transform_1(%arg0: i32) -> (i32, i32) {
    %c0_i32 = arith.constant 0 : i32
    %c0_i32_0 = arith.constant 0 : i32
    return %arg0, %c0_i32 : i32, i32
  }
  func.func @transform_2(%arg0: i32) -> (i32, i32) {
    %c0_i32 = arith.constant 0 : i32
    %c0_i32_0 = arith.constant 0 : i32
    %c0_i32_1 = arith.constant 0 : i32
    return %c0_i32, %c0_i32_0 : i32, i32
  }
  func.func @transform_3(%arg0: i32) -> (i32, i32) {
    %c0_i32 = arith.constant 0 : i32
    %c0_i32_0 = arith.constant 0 : i32
    %c0_i32_1 = arith.constant 0 : i32
    return %c0_i32, %c0_i32_0 : i32, i32
  }
  func.func @transform_4(%arg0: i32) -> (i32, i32) {
    %c0_i32 = arith.constant 0 : i32
    %c0_i32_0 = arith.constant 0 : i32
    %c0_i32_1 = arith.constant 0 : i32
    return %c0_i32, %c0_i32_0 : i32, i32
  }
  func.func @transform_5(%arg0: i32) -> (i32, i32) {
    %c0_i32 = arith.constant 0 : i32
    %c0_i32_0 = arith.constant 0 : i32
    %c0_i32_1 = arith.constant 0 : i32
    return %c0_i32, %c0_i32_0 : i32, i32
  }
  func.func @transform_6(%arg0: i32) -> (i32, i32) {
    %c0_i32 = arith.constant 0 : i32
    %c0_i32_0 = arith.constant 0 : i32
    %c0_i32_1 = arith.constant 0 : i32
    return %c0_i32, %c0_i32_0 : i32, i32
  }
  func.func @transform_7(%arg0: i32) -> (i32, i32) {
    %c0_i32 = arith.constant 0 : i32
    %c0_i32_0 = arith.constant 0 : i32
    return %arg0, %c0_i32 : i32, i32
  }
}

</mosaic_0001>

<bundles_post_ra>
// kernel: _forward.1
= control target key start
LH: loop header
LB: loop body
LE: loop exit
PB: predicated region body
PF: predicated region fallthrough
CT: control target
= control target key end

     0   :  { %v455_v2 = vmov 0.0|0.0   ;;  %vm456_vm0 = vmmov 0   ;;  %v457_v4 = vmov 0.0   ;;  %s603_s0 = inlined_call_operand.vmem [shape: f32[8,32], index: 0, kind: input, shape index: {}]   ;;  %s604_s1 = inlined_call_operand.vmem [shape: f32[8,16], index: 1, kind: input, shape index: {}]   ;;  %s605_s2 = inlined_call_operand.vmem [shape: f32[32,128], index: 2, kind: input, shape index: {}]   ;;  %s606_s3 = inlined_call_operand.vmem [shape: f32[16,128], index: 3, kind: input, shape index: {}]   ;;  %s607_s4 = inlined_call_operand.vmem [shape: f32[1,128], index: 4, kind: input, shape index: {}]   ;;  %s608_s5 = inlined_call_operand.vmem [shape: f32[128,8], index: 5, kind: input, shape index: {}]   ;;  %s609_s6 = inlined_call_operand.vmem [shape: f32[1,8], index: 6, kind: input, shape index: {}]   ;;  %s610_s7 = inlined_call_operand.hbm [shape: f32[8,8], index: 7, kind: output, shape index: {}]  }
   0x1   :  { %v33_v0 = vld [vmem:[%s606_s3] sm:$0xff]  ;;  %v34_v1 = vld [vmem:[%s606_s3 + $0x8] sm:$0xff]  ;;  %390 = vmatprep.subr.bf16.mxu1 %v455_v2  ;;  %341 = vmatprep.mubr.msk.f32.mxu1 %vm456_vm0, %v457_v4 }
   0x2   :  { %v391_v3 = vpack.c.bf16 %v34_v1, %v33_v0  ;;  %v28_v5 = vld [vmem:[%s605_s2] sm:$0xff]  ;;  %v29_v6 = vld [vmem:[%s605_s2 + $0x8] sm:$0xff]  ;;  %399 = vmatprep.subr.bf16.mxu0 %v455_v2  ;;  %387 = vmatprep.mubr.msk.f32.mxu0 %vm456_vm0, %v457_v4 }
   0x3   :  { %12 = vsyncpa [#allocation3], 0  ;;  %v32_v7 = vld [vmem:[%s604_s1] sm:$0xff]  ;;  %vm35_vm1 = vcmask 130048   ;;  %v394_v8 = vpack.c.bf16 %v29_v6, %v28_v5  ;;  %v30_v9 = vld [vmem:[%s605_s2 + $0x10] sm:$0xff]  ;;  %vm109_vm2 = vcmask 261120  }
   0x4   :  { %392 = vmatpush3.bf16.msra.mxu1 %v391_v3  ;;  %v31_v10 = vld [vmem:[%s605_s2 + $0x18] sm:$0xff]  ;;  %v27_v12 = vld [vmem:[%s603_s0] sm:$0xff]  ;;  %v199_v14 = vld [vmem:[%s608_s5 + $0x8] sm:$0xff]  ;;  %s458_s21 = smov [#allocation2]   ;;  %vm291_vm3 = vcmask 64512  }
   0x5   :  { %393 = vmatprep.subr.bf16.mxu1 %v455_v2  ;;  %v397_v11 = vpack.c.bf16 %v31_v10, %v30_v9  ;;  %v198_v13 = vld [vmem:[%s608_s5] sm:$0xff]  ;;  %v200_v16 = vld [vmem:[%s608_s5 + $0x10] sm:$0xff]  ;;  %v201_v17 = vld [vmem:[%s608_s5 + $0x18] sm:$0xff]  ;;  %s299_s22 = sshll.u32 %s458_s21, 4  ;;  %s300_s22 = int_to_ptr.vmem [resolvable:$true] %s299_s22 }
   0x6   :  { %v400_v15 = vpack.c.bf16 %v199_v14, %v198_v13  ;;  %v403_v18 = vpack.c.bf16 %v201_v17, %v200_v16  ;;  %v202_v19 = vld [vmem:[%s608_s5 + $0x20] sm:$0xff]  ;;  %v203_v20 = vld [vmem:[%s608_s5 + $0x28] sm:$0xff]  ;;  %v204_v22 = vld [vmem:[%s608_s5 + $0x30] sm:$0xff]  ;;  %p436_p1 = scmp.lt.s32.totalorder %s300_s22, %s300_s22 }
   0x7   :  { %342 = vmatmul.mubr.msk.f32.vlgmr.msra.gmra.mrb[0].mxu1 %vm35_vm1, %v32_v7  ;;  %v406_v21 = vpack.c.bf16 %v203_v20, %v202_v19  ;;  %v205_v23 = vld [vmem:[%s608_s5 + $0x38] sm:$0xff]  ;;  %v206_v25 = vld [vmem:[%s608_s5 + $0x40] sm:$0xff]  ;;  %v207_v26 = vld [vmem:[%s608_s5 + $0x48] sm:$0xff] }
   0x8   :  { %395 = vmatpush3.bf16.msra.mxu1 %v394_v8  ;;  %352 = vmatprep.mubr.msk.f32.mxu1 %vm456_vm0, %v457_v4  ;;  %v409_v24 = vpack.c.bf16 %v205_v23, %v204_v22  ;;  %v412_v27 = vpack.c.bf16 %v207_v26, %v206_v25  ;;  %v208_v28 = vld [vmem:[%s608_s5 + $0x50] sm:$0xff]  ;;  %v209_v29 = vld [vmem:[%s608_s5 + $0x58] sm:$0xff]  ;;  %v210_v31 = vld [vmem:[%s608_s5 + $0x60] sm:$0xff] }
   0x9   :  { %396 = vmatprep.subr.bf16.mxu1 %v455_v2  ;;  %401 = vmatpush3.bf16.msra.mxu0 %v400_v15  ;;  %v415_v30 = vpack.c.bf16 %v209_v29, %v208_v28  ;;  %v211_v32 = vld [vmem:[%s608_s5 + $0x68] sm:$0xff]  ;;  %v212_v34 = vld [vmem:[%s608_s5 + $0x70] sm:$0xff]  ;;  %v213_v35 = vld [vmem:[%s608_s5 + $0x78] sm:$0xff] }
   0xa   :  { %402 = vmatprep.subr.bf16.mxu0 %v455_v2  ;;  %v418_v33 = vpack.c.bf16 %v211_v32, %v210_v31  ;;  %v421_v36 = vpack.c.bf16 %v213_v35, %v212_v34  ;;  %v309_v40 = vld [vmem:[%s607_s4] ss:$0 sm:$0xff]  ;;  %s431_s4 = scalar_lea.vmem %s300_s22, 128 }
   0xb   :  { %v311_v49 = vld [vmem:[%s609_s6] ss:$0 sm:$0xff]  ;;  %p432_p0 = scmp.ne.s32.totalorder %s300_s22, %s431_s4  ;;  %p437_p2 = scmp.lt.s32.totalorder %s431_s4, %s431_s4 }
   0xc   :  { %398 = vmatpush3.bf16.msra.mxu1 %v397_v11 }
   0xd   :  { %404 = vmatpush3.bf16.msra.mxu0 %v403_v18  ;;  %p438_p3 = por %p437_p2, %p436_p1 }
   0xe   :  { %405 = vmatprep.subr.bf16.mxu0 %v455_v2 }
   0xf   :  { %353 = vmatmul.mubr.msk.f32.vlgmr.msra.gmra.mrb[2].mxu1 %vm109_vm2, %v27_v12  ;;  %p439_p4 = pnand %p438_p3, %p432_p0 }
  0x11   :  { %407 = vmatpush3.bf16.msra.mxu0 %v406_v21 }
  0x12   :  { %408 = vmatprep.subr.bf16.mxu0 %v455_v2 }
  0x15   :  { %410 = vmatpush3.bf16.msra.mxu0 %v409_v24 }
  0x16   :  { %411 = vmatprep.subr.bf16.mxu0 %v455_v2 }
  0x19   :  { %413 = vmatpush3.bf16.msra.mxu0 %v412_v27 }
  0x1a   :  { %414 = vmatprep.subr.bf16.mxu0 %v455_v2 }
  0x1d   :  { %416 = vmatpush3.bf16.msra.mxu0 %v415_v30 }
  0x1e   :  { %417 = vmatprep.subr.bf16.mxu0 %v455_v2 }
  0x21   :  { %419 = vmatpush3.bf16.msra.mxu0 %v418_v33 }
  0x22   :  { %420 = vmatprep.subr.bf16.mxu0 %v455_v2 }
  0x25   :  { %422 = vmatpush3.bf16.msra.mxu0 %v421_v36 }
  0xda   :  { %v105_v37 = vpop.f32.mrb[0].mxu1 }
  0xdb   :  { %v343_v38 = vpop.f32.mrb[1].mxu1 }
  0xe2   :  { %v179_v39 = vpop.f32.mrb[2].mxu1 }
  0xe3   :  { %v180_v41 = vadd.f32 %v179_v39, %v105_v37  ;;  %v354_v42 = vpop.f32.mrb[3].mxu1 }
  0xe5   :  { %v190_v43 = vadd.f32 %v309_v40, %v180_v41 }
  0xe7   :  { %v310_v44 = vmul.f32 -1.442695, %v190_v43 }
  0xe9   :  { %427 = vpow2.f32 %v310_v44 }
  0xf3   :  { %v428_v45 = vpop.eup %427 }
  0xf4   :  { %v194_v46 = vadd.f32 1.0, %v428_v45 }
  0xf6   :  { %429 = vrcp.f32 %v194_v46 }
 0x100   :  { %v430_v47 = vpop.eup %429 }
 0x101   :  { %v197_v48 = vmul.f32 %v430_v47, %v190_v43 }
 0x103   :  { %388 = vmatmul.mubr.f32.vlgmr.msra.gmra.mrb[0].mxu0 %v197_v48 }
 0x1d6   :  { %v287_v50 = vpop.f32.mrb[0].mxu0 }
 0x1d7   :  { %v288_v51 = vadd.f32 %v311_v49, %v287_v50  ;;  %v389_v52 = vpop.f32.mrb[1].mxu0 }
 0x1d9   :  { %292 = vst.msk [vmem:[#allocation2] sm:$0xff] %vm291_vm3, %v288_v51 }
 0x1da   :  { %442 = shalt.err (!%p439_p4)
}
 0x1db   :  { %s443_s25 = scalar_lea.hbm %s610_s7, 128 }
 0x1dc   :  { %p444_p5 = scmp.ne.s32.totalorder %s610_s7, %s443_s25  ;;  %p447_p6 = scmp.lt.u32.totalorder %s443_s25, %s610_s7 }
 0x1de   :  { %p449_p7 = pnand %p447_p6, %p444_p5 }
 0x1e0   :  { %452 = shalt.err (!%p449_p7)
}
 0x1e1   :  { %302 = dma.vmem_to_hbm [thread:$0]  %s300_s22, 128, %s610_s7, [#allocation3]  }
 0x1e2   :  { %453 = dma.done.wait [#allocation3], 128  }
 0x1e3   :  { %454 = vsyncadd [#allocation3], 4294967168 }
 0x1e4   :  { %306 = vsyncpa [#allocation3], 1 }

</bundles_post_ra>
